<compile_context>
chip_gen: v5e
topology: v5e:2x2
jax: 0.10.0
libtpu: 0.0.40
codegen_flags: <defaults>
</compile_context>

<pallas_src>
import functools
import math

import jax
import jax.numpy as jnp
from jax.experimental import pallas as pl
from jax.experimental.pallas import tpu as pltpu


def make_positional_encoding(dim_model: int, max_len: int = 5000) -> jnp.ndarray:
    """Deterministic sinusoidal PE table (max_len, dim_model), matching PyTorch."""
    position = jnp.arange(0, max_len, dtype=jnp.float32)[:, None]            # (L, 1)
    div_term = jnp.exp(jnp.arange(0, dim_model, 2, dtype=jnp.float32)
                       * (-math.log(10000.0) / dim_model))                   # (D/2,)
    pe = jnp.zeros((max_len, dim_model), dtype=jnp.float32)
    pe = pe.at[:, 0::2].set(jnp.sin(position * div_term))
    pe = pe.at[:, 1::2].set(jnp.cos(position * div_term))
    return pe                                                                # (L, D)


def _round_up(x: int, m: int) -> int:
    return ((x + m - 1) // m) * m


_TARGET_TILE_BYTES = 4 << 20       # ~4 MiB x-tile; ~18 MiB live with double-buffering


def _choose_tiles(seq_len: int, batch: int, dim: int, itemsize: int, *,
                  batch_first: bool, fold: bool,
                  tile_seq=None, tile_batch=None,
                  target_bytes: int = _TARGET_TILE_BYTES):
    """Pick (seq_tile, batch_tile) honouring dtype-aware sublane alignment."""
    packing = max(1, 4 // itemsize)        # rows per sublane: f32=1, bf16=2, int8=4
    sub = 8 * packing                      # second-minor alignment for x's dtype

    if fold:                               # x block (t_b, t_s*dim), pe block (1, t_s*dim)
        b_align = sub
        s_align = 128 // math.gcd(dim, 128)     # makes t_s*dim a multiple of 128 lanes
    elif batch_first:                      # x block (t_b, t_s, dim), pe block (t_s, dim)
        b_align = 1                        # t_b is a leading dim
        s_align = sub                      # t_s is second-minor for x (and pe)
    else:                                  # x block (t_s, t_b, dim), pe block (t_s, dim)
        b_align = sub                      # t_b is second-minor
        s_align = 8                        # t_s is pe's second-minor (pe is f32)

    # --- batch tile ---
    if tile_batch is not None:
        t_b = max(1, min(tile_batch, batch))
    elif batch <= max(b_align, 8):
        t_b = batch                        # full batch dim satisfies the block rule
    else:
        t_b = max(b_align, 8)

    # --- seq tile (aim for ~target_bytes per x tile) ---
    if tile_seq is not None:
        t_s = min(_round_up(tile_seq, s_align), _round_up(seq_len, s_align))
    else:
        rows = max(1, target_bytes // max(1, t_b * dim * itemsize))
        t_s = min(_round_up(rows, s_align), _round_up(seq_len, s_align))
        # Keep >=2 grid steps along a parallel axis when possible (v7x megacore,
        # DMA/compute overlap).
        if pl.cdiv(batch, t_b) == 1 and t_s >= seq_len and seq_len >= 2 * s_align:
            t_s = _round_up(pl.cdiv(seq_len, 2), s_align)
    t_s = max(t_s, s_align)
    return t_s, t_b


def _pe_add_kernel_folded(x_ref, pe_ref, o_ref):
    # x_ref: (t_b, t_s*D), pe_ref: (1, t_s*D) float32 — broadcast over batch rows.
    o_ref[...] = (x_ref[...].astype(jnp.float32) + pe_ref[...]).astype(o_ref.dtype)


def _pe_add_kernel_3d(x_ref, pe_ref, o_ref, *, batch_axis: int):
    # x_ref: (tS, tB, D) or (tB, tS, D); pe_ref: (tS, D) float32.
    pe = jnp.expand_dims(pe_ref[...], axis=batch_axis)
    o_ref[...] = (x_ref[...].astype(jnp.float32) + pe).astype(o_ref.dtype)


def positional_encoding_forward(x: jnp.ndarray, pe_table: jnp.ndarray,
                                batch_first: bool = False,
                                tile_seq=None, tile_batch=None,
                                donate_x: bool = False) -> jnp.ndarray:
    """Pallas forward: x + pe[:seq_len] broadcast over the batch axis."""
    if batch_first:
        batch, seq_len, dim = x.shape
    else:
        seq_len, batch, dim = x.shape
    assert dim == pe_table.shape[1]
    assert seq_len <= pe_table.shape[0]

    pe_table = pe_table.astype(jnp.float32)        # keep pe in f32 (PyTorch parity)
    itemsize = jnp.dtype(x.dtype).itemsize

    # Lane-fold when D isn't lane-dense (only for batch_first; free reshape in HBM).
    fold = batch_first and (dim % 128 != 0)
    # TODO(synk): lane-fold the batch_first=False layout too when dim % 128 != 0
    # (needs in-kernel pe replication across the batch slice); kept 3-D there.

    t_s, t_b = _choose_tiles(seq_len, batch, dim, itemsize,
                             batch_first=batch_first, fold=fold,
                             tile_seq=tile_seq, tile_batch=tile_batch)
    n_s = pl.cdiv(seq_len, t_s)
    n_b = pl.cdiv(batch, t_b)
    grid = (n_s, n_b)   # batch innermost -> pe tile stays resident across batch tiles

    if fold:
        s_pad = n_s * t_s
        pe_rows = pe_table[:seq_len]
        if s_pad > seq_len:
            pe_rows = jnp.pad(pe_rows, ((0, s_pad - seq_len), (0, 0)))
        pe_arg = pe_rows.reshape(n_s, t_s * dim)             # (n_s, t_s*D), lane-dense
        x_arg = x.reshape(batch, seq_len * dim)              # free minor-dim merge
        x_block = (t_b, t_s * dim)
        x_map = lambda s, b: (b, s)
        pe_block = (1, t_s * dim)
        pe_map = lambda s, b: (s, 0)                         # resident across batch
        kernel = _pe_add_kernel_folded
        call_out_shape = jax.ShapeDtypeStruct(x_arg.shape, x.dtype)
    else:
        pe_arg = pe_table
        x_arg = x
        if batch_first:
            x_block = (t_b, t_s, dim)
            x_map = lambda s, b: (b, s, 0)
            batch_axis = 0
        else:
            x_block = (t_s, t_b, dim)
            x_map = lambda s, b: (s, b, 0)
            batch_axis = 1
        pe_block = (t_s, dim)
        pe_map = lambda s, b: (s, 0)                         # resident across batch
        kernel = functools.partial(_pe_add_kernel_3d, batch_axis=batch_axis)
        call_out_shape = jax.ShapeDtypeStruct(x.shape, x.dtype)

    # VMEM budget: double-buffered x in + out + pe, plus slack.  ~18 MiB at default
    # tiles — fits all generations (v7x: 64 MiB physical).
    x_tile_bytes = t_b * t_s * dim * itemsize
    pe_tile_bytes = t_s * dim * 4
    vmem_need = 2 * (2 * x_tile_bytes + pe_tile_bytes) + (2 << 20)
    vmem_limit = int(max(vmem_need, 16 << 20))

    cost = pl.CostEstimate(
        flops=seq_len * batch * dim,
        transcendentals=0,
        bytes_accessed=2 * seq_len * batch * dim * itemsize + seq_len * dim * 4)

    out = pl.pallas_call(
        kernel,
        out_shape=call_out_shape,
        grid=grid,
        in_specs=[pl.BlockSpec(x_block, x_map),
                  pl.BlockSpec(pe_block, pe_map)],
        out_specs=pl.BlockSpec(x_block, x_map),
        compiler_params=pltpu.CompilerParams(
            dimension_semantics=("parallel", "parallel"),
            vmem_limit_bytes=vmem_limit),
        cost_estimate=cost,
        input_output_aliases=({0: 0} if donate_x else {}),
    )(x_arg, pe_arg)

    if fold:
        out = out.reshape(x.shape)
    return out


if __name__ == "__main__":
    key = jax.random.PRNGKey(0)
    max_len = 64
    pe32 = make_positional_encoding(32, max_len=max_len)
    pe128 = make_positional_encoding(128, max_len=max_len)

    # Check 1: batch_first=False (PyTorch default), x: (seq=8, batch=2, dim=32).
    k0, k1, k2, k3 = jax.random.split(key, 4)
    x0 = jax.random.normal(k0, (8, 2, 32), dtype=jnp.float32)
    y0 = jax.block_until_ready(positional_encoding_forward(x0, pe32, batch_first=False))
    y0_ref = x0 + pe32[:8][:, None, :]
    assert y0.shape == x0.shape
    assert jnp.allclose(y0, y0_ref, atol=1e-6), "mismatch (batch_first=False)"

    # Check 2: batch_first=True with D=32 -> lane-folded layout, 3 seq tiles.
    x1 = jax.random.normal(k1, (2, 24, 32), dtype=jnp.float32)  # (B, S, D)
    y1 = jax.block_until_ready(
        positional_encoding_forward(x1, pe32, batch_first=True, tile_seq=8))
    y1_ref = x1 + pe32[:24][None, :, :]
    assert y1.shape == x1.shape
    assert jnp.allclose(y1, y1_ref, atol=1e-6), "mismatch (batch_first=True, folded)"

    # Check 3: batch_first=True with D=128 -> unfolded lane-dense 3-D layout.
    x2 = jax.random.normal(k2, (2, 16, 128), dtype=jnp.float32)
    y2 = jax.block_until_ready(positional_encoding_forward(x2, pe128, batch_first=True))
    y2_ref = x2 + pe128[:16][None, :, :]
    assert y2.shape == x2.shape
    assert jnp.allclose(y2, y2_ref, atol=1e-6), "mismatch (batch_first=True, D=128)"

    # Check 4: bf16 input, f32 pe kept in VMEM, add in f32, single cast at store.
    x3 = jax.random.normal(k3, (2, 24, 32), dtype=jnp.bfloat16)
    y3 = jax.block_until_ready(positional_encoding_forward(x3, pe32, batch_first=True))
    y3_ref = (x3.astype(jnp.float32) + pe32[:24][None, :, :]).astype(jnp.bfloat16)
    assert y3.shape == x3.shape
    assert jnp.allclose(y3.astype(jnp.float32), y3_ref.astype(jnp.float32),
                        atol=1e-2), "mismatch (bf16)"

    print("KERNEL_OK")
</pallas_src>

<mosaic_0001>
module attributes {stable_mosaic.version = 11 : i64} {
  func.func @_pe_add_kernel_3d(%arg0: i32, %arg1: i32, %arg2: memref<8x2x32xf32, #tpu.memory_space<vmem>>, %arg3: memref<8x32xf32, #tpu.memory_space<vmem>>, %arg4: memref<8x2x32xf32, #tpu.memory_space<vmem>>) attributes {dimension_semantics = [#tpu.dimension_semantics<parallel>, #tpu.dimension_semantics<parallel>], iteration_bounds = array<i64: 1, 1>, scalar_prefetch = 0 : i64, scratch_operands = 0 : i64, tpu.core_type = #tpu.core_type<tc>, window_params = [{transform_indices = @transform_0, window_bounds = array<i64: 8, 2, 32>}, {transform_indices = @transform_1, window_bounds = array<i64: 8, 32>}, {transform_indices = @transform_2, window_bounds = array<i64: 8, 2, 32>}]} {
    %c0 = arith.constant 0 : index
    %c0_0 = arith.constant 0 : index
    %0 = vector.load %arg3[%c0, %c0_0] : memref<8x32xf32, #tpu.memory_space<vmem>>, vector<8x32xf32>
    %1 = vector.shape_cast %0 : vector<8x32xf32> to vector<8x1x32xf32>
    %c0_1 = arith.constant 0 : index
    %c0_2 = arith.constant 0 : index
    %c0_3 = arith.constant 0 : index
    %2 = vector.load %arg2[%c0_1, %c0_2, %c0_3] : memref<8x2x32xf32, #tpu.memory_space<vmem>>, vector<8x2x32xf32>
    %3 = vector.broadcast %1 : vector<8x1x32xf32> to vector<8x2x32xf32>
    %4 = arith.addf %2, %3 : vector<8x2x32xf32>
    %c0_4 = arith.constant 0 : index
    %c0_5 = arith.constant 0 : index
    %c0_6 = arith.constant 0 : index
    %5 = vector.load %arg4[%c0_4, %c0_5, %c0_6] : memref<8x2x32xf32, #tpu.memory_space<vmem>>, vector<8x2x32xf32>
    tpu.vector_store %arg4[%c0_4, %c0_5, %c0_6], %4 {strides = array<i32>} : memref<8x2x32xf32, #tpu.memory_space<vmem>>, vector<8x2x32xf32>,
    return
  }
  func.func @transform_0(%arg0: i32, %arg1: i32) -> (i32, i32, i32) {
    %c0_i32 = arith.constant 0 : i32
    %c0_i32_0 = arith.constant 0 : i32
    return %arg0, %arg1, %c0_i32 : i32, i32, i32
  }
  func.func @transform_1(%arg0: i32, %arg1: i32) -> (i32, i32) {
    %c0_i32 = arith.constant 0 : i32
    %c0_i32_0 = arith.constant 0 : i32
    return %arg0, %c0_i32 : i32, i32
  }
  func.func @transform_2(%arg0: i32, %arg1: i32) -> (i32, i32, i32) {
    %c0_i32 = arith.constant 0 : i32
    %c0_i32_0 = arith.constant 0 : i32
    return %arg0, %arg1, %c0_i32 : i32, i32, i32
  }
}

</mosaic_0001>

<bundles_post_ra>
// kernel: tpu_custom_call.1
= control target key start
LH: loop header
LB: loop body
LE: loop exit
PB: predicated region body
PF: predicated region fallthrough
CT: control target
= control target key end

     0   :  { %vm53_vm0 = vcmask 254976   ;;  %s165_s0 = inlined_call_operand.vmem [shape: f32[8,2,32], index: 0, kind: input, shape index: {}]   ;;  %s166_s1 = inlined_call_operand.vmem [shape: f32[64,32], index: 1, kind: input, shape index: {}]   ;;  %s167_s2 = inlined_call_operand.hbm [shape: f32[8,2,32], index: 2, kind: output, shape index: {}]  }
   0x1   :  { %v12_v0 = vld [vmem:[%s166_s1] sm:$0xff]  ;;  %v25_v10 = vld [vmem:[%s165_s0 + $0x8] sm:$0x3]  ;;  %v26_v16 = vld [vmem:[%s165_s0 + $0xa] sm:$0x3] }
   0x2   :  { %v21_v1 = vld [vmem:[%s165_s0] sm:$0x3]  ;;  %v22_v2 = vld [vmem:[%s165_s0 + $0x2] sm:$0x3]  ;;  %v29_v3 = vperm.slane %v12_v0, 0  ;;  %v14_v4 = vrot.slane %v12_v0, 1 }
   0x3   :  { %v15_v5 = vrot.slane %v12_v0, 2  ;;  %v23_v6 = vld [vmem:[%s165_s0 + $0x4] sm:$0x3]  ;;  %v16_v7 = vrot.slane %v12_v0, 3  ;;  %v24_v8 = vld [vmem:[%s165_s0 + $0x6] sm:$0x3] }
   0x4   :  { %v17_v9 = vrot.slane %v12_v0, 4  ;;  %v18_v11 = vrot.slane %v12_v0, 5  ;;  %v45_v12 = vadd.f32 %v29_v3, %v21_v1  ;;  %v30_v13 = vperm.slane %v14_v4, 0  ;;  %v27_v24 = vld [vmem:[%s165_s0 + $0xc] sm:$0x3] }
   0x5   :  { %v31_v14 = vperm.slane %v15_v5, 0  ;;  %v32_v15 = vperm.slane %v16_v7, 0  ;;  %v19_v19 = vrot.slane %v12_v0, 6  ;;  %v20_v20 = vrot.slane %v12_v0, 7 }
   0x6   :  { %v33_v17 = vperm.slane %v17_v9, 0  ;;  %v34_v18 = vperm.slane %v18_v11, 0  ;;  %54 = vst.msk [vmem:[#allocation2] sm:$0x3] %vm53_vm0, %v45_v12  ;;  %v46_v21 = vadd.f32 %v30_v13, %v22_v2 }
   0x7   :  { %v47_v22 = vadd.f32 %v31_v14, %v23_v6  ;;  %v48_v23 = vadd.f32 %v32_v15, %v24_v8 }
   0x8   :  { %7 = vsyncpa [#allocation3], 0  ;;  %v49_v25 = vadd.f32 %v33_v17, %v25_v10  ;;  %v35_v26 = vperm.slane %v19_v19, 0  ;;  %v28_v27 = vld [vmem:[%s165_s0 + $0xe] sm:$0x3]  ;;  %v36_v28 = vperm.slane %v20_v20, 0  ;;  %v50_v29 = vadd.f32 %v34_v18, %v26_v16 }
   0x9   :  { %55 = vst.msk [vmem:[#allocation2 + $0x2] sm:$0x3] %vm53_vm0, %v46_v21  ;;  %s109_s26 = smov [#allocation2]   ;;  %s68_s30 = sshll.u32 %s167_s2, 4  ;;  %s69_s30 = int_to_ptr.hbm [resolvable:$true] %s68_s30 }
   0xa   :  { %s66_s27 = sshll.u32 %s109_s26, 4  ;;  %56 = vst.msk [vmem:[#allocation2 + $0x4] sm:$0x3] %vm53_vm0, %v47_v22  ;;  %v51_v30 = vadd.f32 %v35_v26, %v27_v24  ;;  %v52_v31 = vadd.f32 %v36_v28, %v28_v27  ;;  %s110_s0 = smov 32   ;;  %s67_s27 = int_to_ptr.vmem [resolvable:$true] %s66_s27 }
   0xb   :  { %57 = vst.msk [vmem:[#allocation2 + $0x6] sm:$0x3] %vm53_vm0, %v48_v23  ;;  %s111_s3 = smov 2  }
   0xc   :  { %58 = vst.msk [vmem:[#allocation2 + $0x8] sm:$0x3] %vm53_vm0, %v49_v25 }
   0xd   :  { %59 = vst.msk [vmem:[#allocation2 + $0xa] sm:$0x3] %vm53_vm0, %v50_v29 }
   0xe   :  { %60 = vst.msk [vmem:[#allocation2 + $0xc] sm:$0x3] %vm53_vm0, %v51_v30 }
   0xf   :  { %61 = vst.msk [vmem:[#allocation2 + $0xe] sm:$0x3] %vm53_vm0, %v52_v31 }
  0x10   :  { %74 = dma.vmem_to_hbm [thread:$0]  %s67_s27, 256, %s69_s30, [#allocation3], %s110_s0, %s110_s0, %s111_s3  }
  0x11   :  { %107 = dma.done.wait [#allocation3], 256  }
  0x12   :  { %108 = vsyncadd [#allocation3], 4294967040 }
  0x13   :  { %79 = vsyncpa [#allocation3], 1 }

</bundles_post_ra>
